<compile_context>
chip_gen: v7x
topology: tpu7x:2x2x1
jax: 0.10.0
libtpu: 0.0.40
codegen_flags: <defaults>
</compile_context>

<pallas_src>
import jax
import jax.numpy as jnp
import numpy as np
from jax.experimental import pallas as pl
from jax.experimental.pallas import tpu as pltpu


# Lane-dense out-feature tile for the FC stream.  bf16 tile = 8192*256*2 = 4 MB,
# double-buffered = 8 MB -> fits v5e's 16 MiB default scoped-VMEM limit.
# (On v7x, TJ=512 + vmem_limit_bytes~32MiB amortizes per-step overhead a bit
#  more; 256 is the portable default.)
FC_TILE_J = 256


# ---------------------------------------------------------------------------
# Kernels
# ---------------------------------------------------------------------------

def conv1x1_bn_relu_kernel(x_ref, wc_ref, scale_ref, bias_ref, h_ref):
    # x_ref    : (N*H*W, Cin) f32   activations, channels on the lane dim
    # wc_ref   : (Cin, Cout)  f32   1x1 conv weight
    # scale_ref: (1, Cout)    f32   folded BN scale
    # bias_ref : (1, Cout)    f32   folded BN bias (conv bias included)
    # h_ref    : (N*H*W, Cout) bf16
    y = jnp.dot(x_ref[...], wc_ref[...], preferred_element_type=jnp.float32)
    h_ref[...] = jnp.maximum(y * scale_ref[...] + bias_ref[...], 0.0).astype(h_ref.dtype)


def fc_kernel(h_ref, wt_ref, bf_ref, out_ref):
    # h_ref  : (N, K)   bf16  resident in VMEM across all grid steps
    # wt_ref : (K, TJ)  bf16  streamed weight tile (double-buffered by Pallas)
    # bf_ref : (1, TJ)  f32   bias tile
    # out_ref: (N, TJ)  f32
    out_ref[...] = (
        jnp.dot(h_ref[...], wt_ref[...], preferred_element_type=jnp.float32)
        + bf_ref[...]
    )


# ---------------------------------------------------------------------------
# One-time parameter preprocessing (weight-load time; cache the result)
# ---------------------------------------------------------------------------

def prepare_outblockactor_params(conv_w, conv_b, gamma, beta, mean, var,
                                 fc_w, fc_b, eps=1e-5, tile_j=FC_TILE_J):
    """Fold BN, permute/pad/cast the FC weight.  Run once, reuse every forward."""
    Cout, Cin = conv_w.shape[0], conv_w.shape[1]
    Fout, Kfc = fc_w.shape
    P = Kfc // Cout                                   # 64 spatial positions

    # 1x1 conv weight -> (Cin, Cout) so the conv is a single lane-dense matmul.
    wc = jnp.transpose(conv_w.reshape(Cout, Cin), (1, 0)).astype(jnp.float32)

    # Fold BatchNorm (inference) + conv bias into per-channel scale / bias.
    s = (gamma / jnp.sqrt(var + eps)).astype(jnp.float32)
    scale2d = s.reshape(1, Cout)
    bias2d = (s * (conv_b - mean) + beta).astype(jnp.float32).reshape(1, Cout)

    # FC weight: PyTorch flattens (C, H, W) -> column k = c*P + hw.  The kernel
    # flattens h in NHWC order -> row k = hw*Cout + c.  Permute columns once,
    # transpose to (in, out), zero-pad out-features to a multiple of tile_j,
    # and cast to bf16 for the streamed HBM->VMEM read.
    Fpad = tile_j * pl.cdiv(Fout, tile_j)             # 4272 -> 4352 = 17*256
    wt = jnp.transpose(fc_w.reshape(Fout, Cout, P), (2, 1, 0)).reshape(Kfc, Fout)
    wt = jnp.pad(wt, ((0, 0), (0, Fpad - Fout))).astype(jnp.bfloat16)
    bf = jnp.pad(fc_b.astype(jnp.float32), (0, Fpad - Fout)).reshape(1, Fpad)

    return dict(wc=wc, scale=scale2d, bias=bias2d, wt=wt, bf=bf,
                n_out=int(Fout), n_out_padded=int(Fpad), tile_j=int(tile_j))


# ---------------------------------------------------------------------------
# Forward wrapper
# ---------------------------------------------------------------------------

def outblockactor_forward(x_nchw, params):
    """x_nchw: (N, 256, 8, 8) float32; params from prepare_outblockactor_params()."""
    wc, scale2d, bias2d = params["wc"], params["scale"], params["bias"]
    wt, bf = params["wt"], params["bf"]
    Fout, Fpad, TJ = params["n_out"], params["n_out_padded"], params["tile_j"]

    N, Cin, H, W = x_nchw.shape
    Cout = wc.shape[1]
    P = H * W                                         # 64
    Kfc = Cout * P                                    # 8192

    # NCHW -> (N*P, Cin): channels on the lane dim (lane-dense, 256 = 2*128).
    x2d = jnp.transpose(x_nchw, (0, 2, 3, 1)).reshape(N * P, Cin).astype(jnp.float32)

    # ---- stage 1: 1x1 conv + folded BN + ReLU (tiny, fully VMEM-resident) ----
    h2d = pl.pallas_call(
        conv1x1_bn_relu_kernel,
        out_shape=jax.ShapeDtypeStruct((N * P, Cout), jnp.bfloat16),
        in_specs=[pl.BlockSpec(memory_space=pltpu.MemorySpace.VMEM)] * 4,
        out_specs=pl.BlockSpec(memory_space=pltpu.MemorySpace.VMEM),
    )(x2d, wc, scale2d, bias2d)

    # Row-major reshape (free): h[n, hw*Cout + c] matches wt's row order.
    h = h2d.reshape(N, Kfc)

    # ---- stage 2: Linear(8192 -> 4272), streamed over padded out-feature tiles
    J = Fpad // TJ                                    # exact grid: 17 tiles
    out_padded = pl.pallas_call(
        fc_kernel,
        out_shape=jax.ShapeDtypeStruct((N, Fpad), jnp.float32),
        grid=(J,),
        in_specs=[
            pl.BlockSpec((N, Kfc), lambda j: (0, 0)),     # h: resident (constant block)
            pl.BlockSpec((Kfc, TJ), lambda j: (0, j)),    # bf16 weight tile stream
            pl.BlockSpec((1, TJ), lambda j: (0, j)),      # bias tile
        ],
        out_specs=pl.BlockSpec((N, TJ), lambda j: (0, j)),
        compiler_params=pltpu.CompilerParams(
            dimension_semantics=("parallel",)),           # v7x: shard tiles over 2 TCs
    )(h, wt, bf)

    return out_padded[:, :Fout]


# ---------------------------------------------------------------------------
# Pure-JAX reference (mirrors the PyTorch module, inference-mode BN, all f32)
# ---------------------------------------------------------------------------

def outblockactor_reference(x_nchw, conv_w, conv_b, gamma, beta, mean, var,
                            fc_w, fc_b, eps=1e-5):
    N, Cin, H, W = x_nchw.shape
    Cout = conv_w.shape[0]
    xf = x_nchw.reshape(N, Cin, H * W)                      # (N, Cin, 64)
    w2 = conv_w.reshape(Cout, Cin)
    y = jnp.einsum('oc,ncp->nop', w2, xf) + conv_b.reshape(1, Cout, 1)
    s = gamma / jnp.sqrt(var + eps)
    y = s.reshape(1, Cout, 1) * (y - mean.reshape(1, Cout, 1)) + beta.reshape(1, Cout, 1)
    p = jnp.maximum(y, 0.0).reshape(N, Cout * H * W)        # (C,H,W) flatten = torch .view
    return p @ fc_w.T + fc_b


# ---------------------------------------------------------------------------
# Test
# ---------------------------------------------------------------------------

if __name__ == "__main__":
    # Shapes fixed by the module: Conv2d(256, 128, 1), 8x8 spatial, fc -> 4272.
    N, Cin, H, W = 2, 256, 8, 8
    Cout, Fout = 128, 4272
    eps = 1e-5

    key = jax.random.PRNGKey(0)
    ks = jax.random.split(key, 9)
    x = jax.random.normal(ks[0], (N, Cin, H, W), dtype=jnp.float32)
    conv_w = jax.random.normal(ks[1], (Cout, Cin, 1, 1), dtype=jnp.float32) / jnp.sqrt(Cin * 1.0)
    conv_b = 0.1 * jax.random.normal(ks[2], (Cout,), dtype=jnp.float32)
    gamma = 1.0 + 0.1 * jax.random.normal(ks[3], (Cout,), dtype=jnp.float32)
    beta = 0.1 * jax.random.normal(ks[4], (Cout,), dtype=jnp.float32)
    mean = 0.1 * jax.random.normal(ks[5], (Cout,), dtype=jnp.float32)
    var = 1.0 + 0.1 * jax.random.uniform(ks[6], (Cout,), dtype=jnp.float32)
    fc_w = jax.random.normal(ks[7], (Fout, Cout * H * W), dtype=jnp.float32) / jnp.sqrt(Cout * H * W * 1.0)
    fc_b = 0.1 * jax.random.normal(ks[8], (Fout,), dtype=jnp.float32)

    # One-time weight preprocessing (cached; NOT on the per-forward path).
    params = prepare_outblockactor_params(conv_w, conv_b, gamma, beta, mean, var,
                                          fc_w, fc_b, eps)
    jax.block_until_ready([params[k] for k in ("wc", "scale", "bias", "wt", "bf")])

    out = jax.block_until_ready(outblockactor_forward(x, params))
    ref = jax.block_until_ready(
        outblockactor_reference(x, conv_w, conv_b, gamma, beta, mean, var, fc_w, fc_b, eps))

    out_np, ref_np = np.asarray(out), np.asarray(ref)
    assert out_np.shape == (N, Fout), out_np.shape
    rel_err = np.linalg.norm(out_np - ref_np) / (np.linalg.norm(ref_np) + 1e-12)
    # Tolerance deliberately covers the bf16 weight/activation stream
    # (f32 accumulation): typical rel Frobenius error is a few 1e-3.
    if not np.isfinite(rel_err) or rel_err > 2e-2:
        raise AssertionError(
            f"Pallas OutBlockactor mismatch vs JAX reference (rel Frobenius err {rel_err:.3e})")

    print("KERNEL_OK")
</pallas_src>

<mosaic_0001>
module attributes {stable_mosaic.version = 11 : i64} {
  func.func @conv1x1_bn_relu_kernel(%arg0: memref<128x256xf32, #tpu.memory_space<vmem>>, %arg1: memref<256x128xf32, #tpu.memory_space<vmem>>, %arg2: memref<1x128xf32, #tpu.memory_space<vmem>>, %arg3: memref<1x128xf32, #tpu.memory_space<vmem>>, %arg4: memref<128x128xbf16, #tpu.memory_space<vmem>>) attributes {dimension_semantics = [], scalar_prefetch = 0 : i64, scratch_operands = 0 : i64, tpu.core_type = #tpu.core_type<tc>} {
    %c0 = arith.constant 0 : index
    %c0_0 = arith.constant 0 : index
    %0 = vector.load %arg0[%c0, %c0_0] : memref<128x256xf32, #tpu.memory_space<vmem>>, vector<128x256xf32>
    %c0_1 = arith.constant 0 : index
    %c0_2 = arith.constant 0 : index
    %1 = vector.load %arg1[%c0_1, %c0_2] : memref<256x128xf32, #tpu.memory_space<vmem>>, vector<256x128xf32>
    %cst = arith.constant dense<0.000000e+00> : vector<128x128xf32>
    %2 = tpu.matmul %0, %1, %cst {dimension_numbers = #tpu.dot_dimension_numbers<[1], [0], [0], [1], [0, 0, 1, 1], [], []>} : vector<128x256xf32>, vector<256x128xf32>, vector<128x128xf32> -> vector<128x128xf32>
    %c0_3 = arith.constant 0 : index
    %c0_4 = arith.constant 0 : index
    %3 = vector.load %arg2[%c0_3, %c0_4] : memref<1x128xf32, #tpu.memory_space<vmem>>, vector<1x128xf32>
    %4 = vector.broadcast %3 : vector<1x128xf32> to vector<128x128xf32>
    %5 = arith.mulf %2, %4 : vector<128x128xf32>
    %c0_5 = arith.constant 0 : index
    %c0_6 = arith.constant 0 : index
    %6 = vector.load %arg3[%c0_5, %c0_6] : memref<1x128xf32, #tpu.memory_space<vmem>>, vector<1x128xf32>
    %7 = vector.broadcast %6 : vector<1x128xf32> to vector<128x128xf32>
    %8 = arith.addf %5, %7 : vector<128x128xf32>
    %cst_7 = arith.constant 0.000000e+00 : f32
    %9 = vector.broadcast %cst_7 : f32 to vector<128x128xf32>
    %10 = arith.maximumf %8, %9 : vector<128x128xf32>
    %11 = arith.truncf %10 : vector<128x128xf32> to vector<128x128xbf16>
    %c0_8 = arith.constant 0 : index
    %c0_9 = arith.constant 0 : index
    %12 = vector.load %arg4[%c0_8, %c0_9] : memref<128x128xbf16, #tpu.memory_space<vmem>>, vector<128x128xbf16>
    tpu.vector_store %arg4[%c0_8, %c0_9], %11 {strides = array<i32>} : memref<128x128xbf16, #tpu.memory_space<vmem>>, vector<128x128xbf16>,
    return
  }
}

</mosaic_0001>

<bundles_post_ra>
// kernel: tpu_custom_call.1
= control target key start
LH: loop header
LB: loop body
LE: loop exit
PB: predicated region body
PF: predicated region fallthrough
CT: control target
= control target key end

     0   :  { %9 = vsyncpa [#allocation3], 0  ;;  %s817_s0 = inlined_call_operand.hbm [shape: f32[128,256], index: 0, kind: input, shape index: {}]   ;;  %s818_s1 = inlined_call_operand.hbm [shape: f32[256,128], index: 1, kind: input, shape index: {}]   ;;  %s819_s2 = inlined_call_operand.vmem [shape: f32[1,128], index: 2, kind: input, shape index: {}]   ;;  %s820_s3 = inlined_call_operand.vmem [shape: f32[1,128], index: 3, kind: input, shape index: {}]   ;;  %s821_s4 = inlined_call_operand.hbm [shape: bf16[128,128], index: 4, kind: output, shape index: {}]  }
   0x1   :  { %10 = vsyncpa [#allocation6], 0 }
   0x2   :  { %11 = vsyncpa [#allocation4], 0  ;;  %s705_s15 = smov [#allocation2]   ;;  %s633_s19 = scalar_lea.hbm %s817_s0, 4096 }
   0x3   :  { %s17_s16 = sshll.u32 %s705_s15, 4  ;;  %p634_p0 = scmp.ne.s32.totalorder %s817_s0, %s633_s19  ;;  %s18_s16 = int_to_ptr.vmem [resolvable:$true] %s17_s16 }
   0x4   :  { %p637_p1 = scmp.lt.u32.totalorder %s633_s19, %s817_s0 }
   0x6   :  { %p639_p2 = pnand %p637_p1, %p634_p0 }
   0x8   :  { %642 = shalt.err (!%p639_p2)
}
   0x9   :  { %s643_s24 = scalar_lea.vmem %s18_s16, 4096  ;;  %p648_p4 = scmp.lt.s32.totalorder %s18_s16, %s18_s16 }
   0xa   :  { %p644_p3 = scmp.ne.s32.totalorder %s18_s16, %s643_s24  ;;  %p649_p5 = scmp.lt.s32.totalorder %s643_s24, %s643_s24 }
   0xc   :  { %p650_p6 = por %p649_p5, %p648_p4 }
   0xe   :  { %p651_p7 = pnand %p650_p6, %p644_p3 }
  0x10   :  { %654 = shalt.err (!%p651_p7)
}
  0x11   :  { %s706_s25 = smov 256   ;;  %s707_s26 = smov 16  }
  0x12   :  { %23 = dma.hbm_to_vmem [thread:$0]  %s817_s0, 4096, %s18_s16, [#allocation3], %s706_s25, %s706_s25, %s707_s26  }
  0x13   :  { %s708_s29 = smov [#allocation5]   ;;  %s655_s7 = scalar_lea.hbm %s818_s1, 4096 }
  0x14   :  { %s29_s30 = sshll.u32 %s708_s29, 4  ;;  %p656_p8 = scmp.ne.s32.totalorder %s818_s1, %s655_s7  ;;  %s30_s30 = int_to_ptr.vmem [resolvable:$true] %s29_s30 }
  0x15   :  { %p659_p9 = scmp.lt.u32.totalorder %s655_s7, %s818_s1 }
  0x17   :  { %p661_p10 = pnand %p659_p9, %p656_p8 }
  0x19   :  { %664 = shalt.err (!%p661_p10)
}
  0x1a   :  { %s665_s12 = scalar_lea.vmem %s30_s30, 4096  ;;  %p670_p12 = scmp.lt.s32.totalorder %s30_s30, %s30_s30 }
  0x1b   :  { %p666_p11 = scmp.ne.s32.totalorder %s30_s30, %s665_s12  ;;  %p671_p13 = scmp.lt.s32.totalorder %s665_s12, %s665_s12 }
  0x1d   :  { %p672_p0 = por %p671_p13, %p670_p12 }
  0x1f   :  { %p673_p1 = pnand %p672_p0, %p666_p11 }
  0x21   :  { %676 = shalt.err (!%p673_p1)
}
  0x22   :  { %s709_s0 = smov 128   ;;  %s710_s13 = smov 8  }
  0x23   :  { %35 = dma.hbm_to_vmem [thread:$0]  %s818_s1, 4096, %s30_s30, [#allocation6], %s709_s0, %s709_s0, %s710_s13  }
  0x24   :  { %699 = dma.done.wait [#allocation3], 4096  }
  0x25   :  { %700 = vsyncadd [#allocation3], 4294963200 }
  0x26   :  { %701 = dma.done.wait [#allocation6], 4096  }
  0x27   :  { %702 = vsyncadd [#allocation6], 4294963200  ;;  %v94_v0 = vld [vmem:[#allocation5 + $0x80] sm:$0xff]  ;;  %v95_v1 = vld [vmem:[#allocation5 + $0x88] sm:$0xff] }
  0x28   :  { %v78_v2 = vld [vmem:[#allocation5] sm:$0xff]  ;;  %v576_v3 = vpack.c.bf16 %v95_v1, %v94_v0  ;;  %v79_v4 = vld [vmem:[#allocation5 + $0x8] sm:$0xff]  ;;  %v96_v5 = vld [vmem:[#allocation5 + $0x90] sm:$0xff] }
  0x29   :  { %v97_v6 = vld [vmem:[#allocation5 + $0x98] sm:$0xff]  ;;  %v578_v7 = vpack.c.bf16 %v79_v4, %v78_v2  ;;  %v80_v9 = vld [vmem:[#allocation5 + $0x10] sm:$0xff]  ;;  %v98_v11 = vld [vmem:[#allocation5 + $0xa0] sm:$0xff] }
  0x2a   :  { %v580_v8 = vpack.c.bf16 %v97_v6, %v96_v5  ;;  %v81_v10 = vld [vmem:[#allocation5 + $0x18] sm:$0xff]  ;;  %577 = vmatprep.subr.bf16.mxu0 %v576_v3  ;;  %608 = vmatprep.subr.bf16.mxu1 %v576_v3  ;;  %v99_v12 = vld [vmem:[#allocation5 + $0xa8] sm:$0xff]  ;;  %v82_v15 = vld [vmem:[#allocation5 + $0x20] sm:$0xff] }
  0x2b   :  { %579 = vmatpush3.bf16.msra.mxu0 %v578_v7  ;;  %616 = vmatpush3.bf16.msra.mxu1 %v578_v7  ;;  %v582_v13 = vpack.c.bf16 %v81_v10, %v80_v9  ;;  %v584_v14 = vpack.c.bf16 %v99_v12, %v98_v11  ;;  %v83_v16 = vld [vmem:[#allocation5 + $0x28] sm:$0xff]  ;;  %v100_v17 = vld [vmem:[#allocation5 + $0xb0] sm:$0xff]  ;;  %v101_v18 = vld [vmem:[#allocation5 + $0xb8] sm:$0xff] }
  0x2c   :  { %581 = vmatprep.subr.bf16.mxu0 %v580_v8  ;;  %609 = vmatprep.subr.bf16.mxu1 %v580_v8  ;;  %v586_v19 = vpack.c.bf16 %v83_v16, %v82_v15  ;;  %v588_v20 = vpack.c.bf16 %v101_v18, %v100_v17  ;;  %v84_v21 = vld [vmem:[#allocation5 + $0x30] sm:$0xff]  ;;  %v85_v22 = vld [vmem:[#allocation5 + $0x38] sm:$0xff]  ;;  %v102_v23 = vld [vmem:[#allocation5 + $0xc0] sm:$0xff] }
  0x2d   :  { %v103_v24 = vld [vmem:[#allocation5 + $0xc8] sm:$0xff]  ;;  %v590_v27 = vpack.c.bf16 %v85_v22, %v84_v21  ;;  %v86_v29 = vld [vmem:[#allocation5 + $0x40] sm:$0xff]  ;;  %v104_v31 = vld [vmem:[#allocation5 + $0xd0] sm:$0xff] }
  0x2e   :  { %v47_v25 = vld [vmem:[#allocation2 + $0x8] sm:$0xff]  ;;  %v592_v28 = vpack.c.bf16 %v103_v24, %v102_v23  ;;  %v105_v32 = vld [vmem:[#allocation5 + $0xd8] sm:$0xff]  ;;  %v88_v35 = vld [vmem:[#allocation5 + $0x50] sm:$0xff] }
  0x2f   :  { %583 = vmatpush3.bf16.msra.mxu0 %v582_v13  ;;  %617 = vmatpush3.bf16.msra.mxu1 %v582_v13  ;;  %v63_v26 = vld [vmem:[#allocation2 + $0x88] sm:$0xff]  ;;  %v596_v34 = vpack.c.bf16 %v105_v32, %v104_v31  ;;  %v89_v36 = vld [vmem:[#allocation5 + $0x58] sm:$0xff]  ;;  %v106_v37 = vld [vmem:[#allocation5 + $0xe0] sm:$0xff] }
  0x30   :  { %585 = vmatprep.subr.bf16.mxu0 %v584_v14  ;;  %610 = vmatprep.subr.bf16.mxu1 %v584_v14  ;;  %v87_v30 = vld [vmem:[#allocation5 + $0x48] sm:$0xff]  ;;  %v598_v39 = vpack.c.bf16 %v89_v36, %v88_v35  ;;  %v90_v41 = vld [vmem:[#allocation5 + $0x60] sm:$0xff]  ;;  %v108_v43 = vld [vmem:[#allocation5 + $0xf0] sm:$0xff] }
  0x31   :  { %174 = vmatprep.mubr.f32.mxu0 %v47_v25  ;;  %214 = vmatprep.mubr.f32.mxu1 %v63_v26  ;;  %v594_v33 = vpack.c.bf16 %v87_v30, %v86_v29  ;;  %v107_v38 = vld [vmem:[#allocation5 + $0xe8] sm:$0xff]  ;;  %v109_v44 = vld [vmem:[#allocation5 + $0xf8] sm:$0xff]  ;;  %v92_v47 = vld [vmem:[#allocation5 + $0x70] sm:$0xff] }
  0x32   :  { %v600_v40 = vpack.c.bf16 %v107_v38, %v106_v37  ;;  %v91_v42 = vld [vmem:[#allocation5 + $0x68] sm:$0xff]  ;;  %v604_v46 = vpack.c.bf16 %v109_v44, %v108_v43  ;;  %v93_v48 = vld [vmem:[#allocation5 + $0x78] sm:$0xff]  ;;  %v46_v50 = vld [vmem:[#allocation2] sm:$0xff] }
  0x33   :  { %587 = vmatpush3.bf16.msra.mxu0 %v586_v19  ;;  %618 = vmatpush3.bf16.msra.mxu1 %v586_v19  ;;  %v602_v45 = vpack.c.bf16 %v91_v42, %v90_v41  ;;  %v606_v49 = vpack.c.bf16 %v93_v48, %v92_v47  ;;  %v62_v51 = vld [vmem:[#allocation2 + $0x80] sm:$0xff]  ;;  %v49_v52 = vld [vmem:[#allocation2 + $0x18] sm:$0xff]  ;;  %v48_v54 = vld [vmem:[#allocation2 + $0x10] sm:$0xff] }
  0x34   :  { %589 = vmatprep.subr.bf16.mxu0 %v588_v20  ;;  %611 = vmatprep.subr.bf16.mxu1 %v588_v20  ;;  %v65_v53 = vld [vmem:[#allocation2 + $0x98] sm:$0xff]  ;;  %v64_v55 = vld [vmem:[#allocation2 + $0x90] sm:$0xff]  ;;  %v51_v56 = vld [vmem:[#allocation2 + $0x28] sm:$0xff] }
  0x35   :  { %v67_v57 = vld [vmem:[#allocation2 + $0xa8] sm:$0xff]  ;;  %v50_v58 = vld [vmem:[#allocation2 + $0x20] sm:$0xff]  ;;  %v53_v60 = vld [vmem:[#allocation2 + $0x38] sm:$0xff] }
  0x36   :  { %v66_v59 = vld [vmem:[#allocation2 + $0xa0] sm:$0xff]  ;;  %v69_v61 = vld [vmem:[#allocation2 + $0xb8] sm:$0xff]  ;;  %v52_v62 = vld [vmem:[#allocation2 + $0x30] sm:$0xff] }
  0x37   :  { %591 = vmatpush3.bf16.msra.mxu0 %v590_v27  ;;  %619 = vmatpush3.bf16.msra.mxu1 %v590_v27  ;;  %v68_v63 = vld [vmem:[#allocation2 + $0xb0] sm:$0xff]  ;;  %v55_v0 = vld [vmem:[#allocation2 + $0x48] sm:$0xff]  ;;  %v54_v2 = vld [vmem:[#allocation2 + $0x40] sm:$0xff] }
  0x38   :  { %593 = vmatprep.subr.bf16.mxu0 %v592_v28  ;;  %612 = vmatprep.subr.bf16.mxu1 %v592_v28  ;;  %v71_v1 = vld [vmem:[#allocation2 + $0xc8] sm:$0xff]  ;;  %v70_v3 = vld [vmem:[#allocation2 + $0xc0] sm:$0xff]  ;;  %v57_v4 = vld [vmem:[#allocation2 + $0x58] sm:$0xff] }
  0x39   :  { %v73_v5 = vld [vmem:[#allocation2 + $0xd8] sm:$0xff]  ;;  %v56_v6 = vld [vmem:[#allocation2 + $0x50] sm:$0xff]  ;;  %v59_v8 = vld [vmem:[#allocation2 + $0x68] sm:$0xff] }
  0x3a   :  { %v72_v7 = vld [vmem:[#allocation2 + $0xd0] sm:$0xff]  ;;  %v75_v9 = vld [vmem:[#allocation2 + $0xe8] sm:$0xff]  ;;  %v58_v10 = vld [vmem:[#allocation2 + $0x60] sm:$0xff] }
  0x3b   :  { %595 = vmatpush3.bf16.msra.mxu0 %v594_v33  ;;  %620 = vmatpush3.bf16.msra.mxu1 %v594_v33  ;;  %v74_v11 = vld [vmem:[#allocation2 + $0xe0] sm:$0xff]  ;;  %v61_v12 = vld [vmem:[#allocation2 + $0x78] sm:$0xff]  ;;  %v60_v14 = vld [vmem:[#allocation2 + $0x70] sm:$0xff] }
  0x3c   :  { %597 = vmatprep.subr.bf16.mxu0 %v596_v34  ;;  %613 = vmatprep.subr.bf16.mxu1 %v596_v34  ;;  %v77_v13 = vld [vmem:[#allocation2 + $0xf8] sm:$0xff]  ;;  %v76_v15 = vld [vmem:[#allocation2 + $0xf0] sm:$0xff]  ;;  %v766_v19 = vld [vmem:[%s819_s2] ss:$0 sm:$0xff]  ;;  %s711_s2 = smov [#allocation7]  }
  0x3d   :  { %v773_v27 = vld [vmem:[%s820_s3] ss:$0 sm:$0xff]  ;;  %s402_s3 = sshll.u32 %s711_s2, 4  ;;  %s403_s3 = int_to_ptr.vmem [resolvable:$true] %s402_s3 }
  0x3e   :  { %s677_s19 = scalar_lea.vmem %s403_s3, 1024  ;;  %p682_p3 = scmp.lt.s32.totalorder %s403_s3, %s403_s3 }
  0x3f   :  { %599 = vmatpush3.bf16.msra.mxu0 %v598_v39  ;;  %621 = vmatpush3.bf16.msra.mxu1 %v598_v39  ;;  %p678_p2 = scmp.ne.s32.totalorder %s403_s3, %s677_s19  ;;  %p683_p4 = scmp.lt.s32.totalorder %s677_s19, %s677_s19 }
  0x40   :  { %601 = vmatprep.subr.bf16.mxu0 %v600_v40  ;;  %614 = vmatprep.subr.bf16.mxu1 %v600_v40 }
  0x41   :  { %p684_p5 = por %p683_p4, %p682_p3 }
  0x43   :  { %603 = vmatpush3.bf16.msra.mxu0 %v602_v45  ;;  %622 = vmatpush3.bf16.msra.mxu1 %v602_v45  ;;  %p685_p6 = pnand %p684_p5, %p678_p2 }
  0x44   :  { %605 = vmatprep.subr.bf16.mxu0 %v604_v46  ;;  %615 = vmatprep.subr.bf16.mxu1 %v604_v46 }
  0x47   :  { %607 = vmatpush3.bf16.msra.mxu0 %v606_v49  ;;  %623 = vmatpush3.bf16.msra.mxu1 %v606_v49 }
  0x4a   :  { %175 = vmatmul.mubr.f32.vlgmr.msra.gmra.mrb[0].mxu0 %v46_v50  ;;  %215 = vmatmul.mubr.f32.vlgmr.msra.gmra.mrb[0].mxu1 %v62_v51 }
  0x4b   :  { %179 = vmatprep.mubr.f32.mxu0 %v49_v52  ;;  %219 = vmatprep.mubr.f32.mxu1 %v65_v53 }
  0x4e   :  { %180 = vmatmul.mubr.f32.gmra.mrb[2].mxu0 %v48_v54  ;;  %220 = vmatmul.mubr.f32.gmra.mrb[2].mxu1 %v64_v55 }
  0x4f   :  { %184 = vmatprep.mubr.f32.mxu0 %v51_v56  ;;  %224 = vmatprep.mubr.f32.mxu1 %v67_v57 }
  0x52   :  { %185 = vmatmul.mubr.f32.gmra.mrb[4].mxu0 %v50_v58  ;;  %225 = vmatmul.mubr.f32.gmra.mrb[4].mxu1 %v66_v59 }
  0x53   :  { %189 = vmatprep.mubr.f32.mxu0 %v53_v60  ;;  %229 = vmatprep.mubr.f32.mxu1 %v69_v61 }
  0x56   :  { %190 = vmatmul.mubr.f32.gmra.mrb[6].mxu0 %v52_v62  ;;  %230 = vmatmul.mubr.f32.gmra.mrb[6].mxu1 %v68_v63 }
  0x57   :  { %194 = vmatprep.mubr.f32.mxu0 %v55_v0  ;;  %234 = vmatprep.mubr.f32.mxu1 %v71_v1 }
  0x5a   :  { %195 = vmatmul.mubr.f32.gmra.mrb[8].mxu0 %v54_v2  ;;  %235 = vmatmul.mubr.f32.gmra.mrb[8].mxu1 %v70_v3 }
  0x5b   :  { %199 = vmatprep.mubr.f32.mxu0 %v57_v4  ;;  %239 = vmatprep.mubr.f32.mxu1 %v73_v5 }
  0x5e   :  { %200 = vmatmul.mubr.f32.gmra.mrb[10].mxu0 %v56_v6  ;;  %240 = vmatmul.mubr.f32.gmra.mrb[10].mxu1 %v72_v7 }
  0x5f   :  { %204 = vmatprep.mubr.f32.mxu0 %v59_v8  ;;  %244 = vmatprep.mubr.f32.mxu1 %v75_v9 }
  0x62   :  { %205 = vmatmul.mubr.f32.gmra.mrb[12].mxu0 %v58_v10  ;;  %245 = vmatmul.mubr.f32.gmra.mrb[12].mxu1 %v74_v11 }
  0x63   :  { %209 = vmatprep.mubr.f32.mxu0 %v61_v12  ;;  %249 = vmatprep.mubr.f32.mxu1 %v77_v13 }
  0x66   :  { %210 = vmatmul.mubr.f32.gmra.mrb[14].mxu0 %v60_v14  ;;  %250 = vmatmul.mubr.f32.gmra.mrb[14].mxu1 %v76_v15 }
 0x11d   :  { %v528_v16 = vpop.f32.mrb[0].mxu0  ;;  %v552_v17 = vpop.f32.mrb[0].mxu1 }
 0x11e   :  { %v529_v18 = vpop.f32.mrb[1].mxu0  ;;  %v553_v20 = vpop.f32.mrb[1].mxu1 }
 0x11f   :  { %v530_v21 = vadd.f32 %v529_v18, %v528_v16  ;;  %v554_v22 = vadd.f32 %v553_v20, %v552_v17 }
 0x121   :  { %v262_v23 = vmul.f32 %v530_v21, %v766_v19  ;;  %v270_v24 = vmul.f32 %v554_v22, %v766_v19  ;;  %v531_v25 = vpop.f32.mrb[2].mxu0  ;;  %v555_v26 = vpop.f32.mrb[2].mxu1 }
 0x122   :  { %v532_v28 = vpop.f32.mrb[3].mxu0  ;;  %v556_v29 = vpop.f32.mrb[3].mxu1 }
 0x123   :  { %v533_v30 = vadd.f32 %v532_v28, %v531_v25  ;;  %v557_v31 = vadd.f32 %v556_v29, %v555_v26  ;;  %v285_v32 = vadd.f32 %v773_v27, %v262_v23  ;;  %v293_v33 = vadd.f32 %v773_v27, %v270_v24 }
 0x125   :  { %v263_v34 = vmul.f32 %v533_v30, %v766_v19  ;;  %v271_v35 = vmul.f32 %v557_v31, %v766_v19  ;;  %v534_v36 = vpop.f32.mrb[4].mxu0  ;;  %v558_v37 = vpop.f32.mrb[4].mxu1  ;;  %v301_v44 = vmax.f32 %v285_v32, 0.0  ;;  %v309_v45 = vmax.f32 %v293_v33, 0.0 }
 0x126   :  { %v535_v38 = vpop.f32.mrb[5].mxu0  ;;  %v559_v39 = vpop.f32.mrb[5].mxu1 }
 0x127   :  { %v286_v40 = vadd.f32 %v773_v27, %v263_v34  ;;  %v294_v41 = vadd.f32 %v773_v27, %v271_v35  ;;  %v536_v42 = vadd.f32 %v535_v38, %v534_v36  ;;  %v560_v43 = vadd.f32 %v559_v39, %v558_v37 }
 0x129   :  { %v302_v46 = vmax.f32 %v286_v40, 0.0  ;;  %v310_v47 = vmax.f32 %v294_v41, 0.0  ;;  %v537_v48 = vpop.f32.mrb[6].mxu0  ;;  %v561_v49 = vpop.f32.mrb[6].mxu1  ;;  %v264_v50 = vmul.f32 %v536_v42, %v766_v19  ;;  %v272_v51 = vmul.f32 %v560_v43, %v766_v19 }
 0x12a   :  { %v538_v52 = vpop.f32.mrb[7].mxu0  ;;  %v562_v53 = vpop.f32.mrb[7].mxu1 }
 0x12b   :  { %v452_v54 = vpack.c.bf16 %v302_v46, %v301_v44  ;;  %v472_v55 = vpack.c.bf16 %v310_v47, %v309_v45  ;;  %v539_v56 = vadd.f32 %v538_v52, %v537_v48  ;;  %v563_v57 = vadd.f32 %v562_v53, %v561_v49 }
 0x12c   :  { %v287_v60 = vadd.f32 %v773_v27, %v264_v50  ;;  %v295_v61 = vadd.f32 %v773_v27, %v272_v51 }
 0x12d   :  { %453 = vst [vmem:[#allocation7] sm:$0xff] %v452_v54   ;;  %492 = vst [vmem:[#allocation7 + $0x20] sm:$0xff] %v472_v55   ;;  %v540_v58 = vpop.f32.mrb[8].mxu0  ;;  %v564_v59 = vpop.f32.mrb[8].mxu1  ;;  %v265_v62 = vmul.f32 %v539_v56, %v766_v19  ;;  %v273_v63 = vmul.f32 %v563_v57, %v766_v19 }
 0x12e   :  { %v541_v0 = vpop.f32.mrb[9].mxu0  ;;  %v565_v1 = vpop.f32.mrb[9].mxu1  ;;  %v303_v10 = vmax.f32 %v287_v60, 0.0  ;;  %v311_v11 = vmax.f32 %v295_v61, 0.0 }
 0x12f   :  { %v542_v2 = vadd.f32 %v541_v0, %v540_v58  ;;  %v566_v3 = vadd.f32 %v565_v1, %v564_v59  ;;  %v288_v4 = vadd.f32 %v773_v27, %v265_v62  ;;  %v296_v5 = vadd.f32 %v773_v27, %v273_v63 }
 0x131   :  { %v266_v6 = vmul.f32 %v542_v2, %v766_v19  ;;  %v274_v7 = vmul.f32 %v566_v3, %v766_v19  ;;  %v543_v8 = vpop.f32.mrb[10].mxu0  ;;  %v567_v9 = vpop.f32.mrb[10].mxu1  ;;  %v304_v12 = vmax.f32 %v288_v4, 0.0  ;;  %v312_v13 = vmax.f32 %v296_v5, 0.0 }
 0x132   :  { %v544_v14 = vpop.f32.mrb[11].mxu0  ;;  %v568_v15 = vpop.f32.mrb[11].mxu1 }
 0x133   :  { %v545_v16 = vadd.f32 %v544_v14, %v543_v8  ;;  %v569_v17 = vadd.f32 %v568_v15, %v567_v9  ;;  %v457_v18 = vpack.c.bf16 %v304_v12, %v303_v10  ;;  %v477_v20 = vpack.c.bf16 %v312_v13, %v311_v11 }
 0x134   :  { %v289_v21 = vadd.f32 %v773_v27, %v266_v6  ;;  %v297_v22 = vadd.f32 %v773_v27, %v274_v7 }
 0x135   :  { %v267_v23 = vmul.f32 %v545_v16, %v766_v19  ;;  %v275_v24 = vmul.f32 %v569_v17, %v766_v19  ;;  %v546_v25 = vpop.f32.mrb[12].mxu0  ;;  %v570_v26 = vpop.f32.mrb[12].mxu1  ;;  %489 = vst [vmem:[#allocation7 + $0x8] sm:$0xff] %v457_v18   ;;  %493 = vst [vmem:[#allocation7 + $0x28] sm:$0xff] %v477_v20  }
 0x136   :  { %v547_v28 = vpop.f32.mrb[13].mxu0  ;;  %v571_v29 = vpop.f32.mrb[13].mxu1  ;;  %v305_v34 = vmax.f32 %v289_v21, 0.0  ;;  %v313_v35 = vmax.f32 %v297_v22, 0.0 }
 0x137   :  { %v290_v30 = vadd.f32 %v773_v27, %v267_v23  ;;  %v298_v31 = vadd.f32 %v773_v27, %v275_v24  ;;  %v548_v32 = vadd.f32 %v547_v28, %v546_v25  ;;  %v572_v33 = vadd.f32 %v571_v29, %v570_v26 }
 0x139   :  { %v306_v36 = vmax.f32 %v290_v30, 0.0  ;;  %v314_v37 = vmax.f32 %v298_v31, 0.0  ;;  %v549_v38 = vpop.f32.mrb[14].mxu0  ;;  %v573_v39 = vpop.f32.mrb[14].mxu1  ;;  %v268_v40 = vmul.f32 %v548_v32, %v766_v19  ;;  %v276_v41 = vmul.f32 %v572_v33, %v766_v19 }
 0x13a   :  { %v550_v42 = vpop.f32.mrb[15].mxu0  ;;  %v574_v43 = vpop.f32.mrb[15].mxu1 }
 0x13b   :  { %v462_v44 = vpack.c.bf16 %v306_v36, %v305_v34  ;;  %v482_v45 = vpack.c.bf16 %v314_v37, %v313_v35  ;;  %v551_v46 = vadd.f32 %v550_v42, %v549_v38  ;;  %v575_v47 = vadd.f32 %v574_v43, %v573_v39 }
 0x13c   :  { %v291_v48 = vadd.f32 %v773_v27, %v268_v40  ;;  %v299_v49 = vadd.f32 %v773_v27, %v276_v41 }
 0x13d   :  { %490 = vst [vmem:[#allocation7 + $0x10] sm:$0xff] %v462_v44   ;;  %494 = vst [vmem:[#allocation7 + $0x30] sm:$0xff] %v482_v45   ;;  %v269_v50 = vmul.f32 %v551_v46, %v766_v19  ;;  %v277_v51 = vmul.f32 %v575_v47, %v766_v19 }
 0x13e   :  { %v307_v54 = vmax.f32 %v291_v48, 0.0  ;;  %v315_v55 = vmax.f32 %v299_v49, 0.0 }
 0x13f   :  { %v292_v52 = vadd.f32 %v773_v27, %v269_v50  ;;  %v300_v53 = vadd.f32 %v773_v27, %v277_v51 }
 0x141   :  { %v308_v56 = vmax.f32 %v292_v52, 0.0  ;;  %v316_v57 = vmax.f32 %v300_v53, 0.0 }
 0x143   :  { %v467_v58 = vpack.c.bf16 %v308_v56, %v307_v54  ;;  %v487_v59 = vpack.c.bf16 %v316_v57, %v315_v55 }
 0x145   :  { %491 = vst [vmem:[#allocation7 + $0x18] sm:$0xff] %v467_v58   ;;  %495 = vst [vmem:[#allocation7 + $0x38] sm:$0xff] %v487_v59  }
 0x146   :  { %688 = shalt.err (!%p685_p6)
}
 0x147   :  { %s689_s22 = scalar_lea.hbm %s821_s4, 1024 }
 0x148   :  { %p690_p7 = scmp.ne.s32.totalorder %s821_s4, %s689_s22  ;;  %p693_p8 = scmp.lt.u32.totalorder %s689_s22, %s821_s4 }
 0x14a   :  { %p695_p9 = pnand %p693_p8, %p690_p7 }
 0x14c   :  { %698 = shalt.err (!%p695_p9)
}
 0x14d   :  { %s712_s27 = smov 64   ;;  %s713_s28 = smov 4  }
 0x14e   :  { %408 = dma.vmem_to_hbm [thread:$0]  %s403_s3, 1024, %s821_s4, [#allocation4], %s712_s27, %s712_s27, %s713_s28  }
 0x14f   :  { %703 = dma.done.wait [#allocation4], 1024  }
 0x150   :  { %704 = vsyncadd [#allocation4], 4294966272 }
 0x151   :  { %412 = vsyncpa [#allocation3], 1 }
 0x152   :  { %413 = vsyncpa [#allocation6], 1 }
 0x153   :  { %414 = vsyncpa [#allocation4], 1 }

</bundles_post_ra>
